<compile_context>
chip_gen: v7x
topology: tpu7x:2x2x1
jax: 0.10.0
libtpu: 0.0.40
codegen_flags: <defaults>
</compile_context>

<pallas_src>
import functools

import numpy as np
import jax
import jax.numpy as jnp
from jax.experimental import pallas as pl
from jax.experimental.pallas import tpu as pltpu


def _tile_plan(n, block_k, block_r):
    """Choose tile sizes for the (rows=2*(n//2+1)) x (K=n) DFT matmul."""
    r_rows = 2 * (n // 2 + 1)                 # stacked [cos; -sin] rows
    tk = n if n <= block_k else block_k        # contraction tile
    tr = r_rows if r_rows <= block_r else block_r
    n_pad = -(-n // tk) * tk
    r_pad = -(-r_rows // tr) * tr
    return r_rows, tr, tk, r_pad, n_pad


@functools.lru_cache(maxsize=32)
def _dft_weights(n, n_pad, r_pad, dtype_name):
    """Stacked, normalized half-spectrum DFT weights, zero-padded to tiles."""
    kh = n // 2 + 1
    k = np.arange(kh, dtype=np.int64)[:, None]
    m = np.arange(n, dtype=np.int64)[None, :]
    phase = (k * m) % n                        # exact int mod-n (no f32 2^24 issue)
    ang = (2.0 * np.pi / n) * phase.astype(np.float64)
    w = np.concatenate([np.cos(ang), -np.sin(ang)], axis=0) / float(n)  # (2*kh, n)
    w_pad = np.zeros((r_pad, n_pad), dtype=np.float64)
    w_pad[: 2 * kh, :n] = w
    out_dtype = jnp.bfloat16 if dtype_name == "bfloat16" else jnp.float32
    return jnp.asarray(w_pad.astype(np.float32), dtype=out_dtype)


def _dft_kernel(w_ref, x_ref, out_ref, acc_ref):
    """acc[r-tile, F] += W[r-tile, k-tile] @ x[k-tile, F] on the MXU."""
    @pl.when(pl.program_id(2) == 0)
    def _init():
        acc_ref[...] = jnp.zeros_like(acc_ref)

    acc_ref[...] += jnp.dot(
        w_ref[...], x_ref[...], preferred_element_type=jnp.float32
    )

    @pl.when(pl.program_id(2) == pl.num_programs(2) - 1)
    def _done():
        out_ref[...] = acc_ref[...].astype(out_ref.dtype)


@functools.partial(jax.jit, static_argnames=("n", "block_k", "block_r"))
def _fft_core(x, w, *, n, block_k, block_r):
    b_dim, seq_len, f_dim = x.shape

    # torch.fft.fft n= handling along dim=1: zero-pad or truncate.
    if n > seq_len:
        x = jnp.pad(x, ((0, 0), (0, n - seq_len), (0, 0)))
    elif n < seq_len:
        x = x[:, :n, :]

    r_rows, tr, tk, r_pad, n_pad = _tile_plan(n, block_k, block_r)
    if n_pad > n:
        x = jnp.pad(x, ((0, 0), (0, n_pad - n), (0, 0)))
    x = x.astype(w.dtype)

    itemsize = jnp.dtype(w.dtype).itemsize
    vmem_need = (2 * (tr * tk * itemsize + tk * f_dim * itemsize + tr * f_dim * 4)
                 + tr * f_dim * 4)
    vmem_limit = int(min(max(2 * vmem_need, 16 * 1024 * 1024), 48 * 1024 * 1024))

    grid = (b_dim, r_pad // tr, n_pad // tk)

    out_pad = pl.pallas_call(
        _dft_kernel,
        out_shape=jax.ShapeDtypeStruct((b_dim, r_pad, f_dim), jnp.float32),
        grid=grid,
        in_specs=[
            # stacked DFT weights: resident in VMEM when a single block suffices
            pl.BlockSpec((tr, tk), lambda b, r, k: (r, k)),
            # x in its natural (B, n, F) layout -> no wrapper transposes
            pl.BlockSpec((None, tk, f_dim), lambda b, r, k: (b, k, 0)),
        ],
        out_specs=pl.BlockSpec((None, tr, f_dim), lambda b, r, k: (b, r, 0)),
        scratch_shapes=[pltpu.VMEM((tr, f_dim), jnp.float32)],
        compiler_params=pltpu.CompilerParams(
            dimension_semantics=("parallel", "parallel", "arbitrary"),
            vmem_limit_bytes=vmem_limit,
        ),
    )(w, x)

    # Hermitian reconstruction (real input): X[k] = conj(X[n-k]) for k > n//2.
    kh = r_rows // 2
    half = out_pad[:, :r_rows, :]
    re_h = half[:, :kh, :]
    im_h = half[:, kh:, :]
    idx = jnp.arange(n)
    src = jnp.where(idx < kh, idx, n - idx)
    sign = jnp.where(idx < kh, 1.0, -1.0).astype(jnp.float32)
    re = jnp.take(re_h, src, axis=1)
    im = jnp.take(im_h, src, axis=1) * sign[None, :, None]
    return jax.lax.complex(re, im)  # complex64, like torch on float32 input


def fft_layer(x, n_features=None, *, block_k=512, block_r=256, use_bfloat16=False):
    """Pallas implementation of FFTLayer.forward (FFT along dim=1, norm='forward')."""
    x = jnp.asarray(x)
    if x.ndim < 2:
        raise ValueError("FFTLayer expects at least 2 dims (FFT along dim=1).")
    assert block_k % 128 == 0 and block_r % 8 == 0, "tile sizes must be MXU-aligned"

    batch, seq_len = x.shape[0], x.shape[1]
    rest = x.shape[2:]
    feat = int(np.prod(rest)) if rest else 1
    x3 = x.reshape(batch, seq_len, feat).astype(jnp.float32)

    n = seq_len if n_features is None else int(n_features)
    dtype_name = "bfloat16" if use_bfloat16 else "float32"
    _, _, _, r_pad, n_pad = _tile_plan(n, block_k, block_r)
    w = _dft_weights(n, n_pad, r_pad, dtype_name)     # cached per (n, tiles, dtype)

    out = _fft_core(x3, w, n=n, block_k=block_k, block_r=block_r)
    return out.reshape((batch, n) + rest)


if __name__ == "__main__":
    root = jax.random.PRNGKey(0)
    k1, k3 = jax.random.split(root)

    # Case 1: module-default usage FFTLayer(n_features=None), (B=2, L=16, F=32).
    x = jax.random.normal(k1, (2, 16, 32), dtype=jnp.float32)
    out = jax.block_until_ready(fft_layer(x))
    ref = jnp.fft.fft(x, axis=1, norm="forward")
    assert out.shape == ref.shape and out.dtype == jnp.complex64
    assert jnp.allclose(out, ref, atol=2e-5, rtol=1e-4), "case 1 mismatch"

    # Case 2: truncation (n_features < L).
    out2 = jax.block_until_ready(fft_layer(x, n_features=8))
    ref2 = jnp.fft.fft(x, n=8, axis=1, norm="forward")
    assert jnp.allclose(out2, ref2, atol=2e-5, rtol=1e-4), "case 2 mismatch"

    # Case 3: zero-padding + multi-block (K-tiled accumulator, row-tiled) path.
    x3 = jax.random.normal(k3, (2, 200, 32), dtype=jnp.float32)
    out3 = jax.block_until_ready(
        fft_layer(x3, n_features=256, block_k=128, block_r=128)
    )
    ref3 = jnp.fft.fft(x3, n=256, axis=1, norm="forward")
    assert out3.shape == ref3.shape
    assert jnp.allclose(out3, ref3, atol=2e-5, rtol=1e-4), "case 3 mismatch"

    print("KERNEL_OK")
</pallas_src>

<mosaic_0001>
module attributes {stable_mosaic.version = 11 : i64} {
  func.func @_dft_kernel(%arg0: i32, %arg1: i32, %arg2: i32, %arg3: memref<18x16xf32, #tpu.memory_space<vmem>>, %arg4: memref<1x16x32xf32, #tpu.memory_space<vmem>>, %arg5: memref<1x18x32xf32, #tpu.memory_space<vmem>>, %arg6: memref<18x32xf32, #tpu.memory_space<vmem>>) attributes {dimension_semantics = [#tpu.dimension_semantics<parallel>, #tpu.dimension_semantics<parallel>, #tpu.dimension_semantics<arbitrary>], iteration_bounds = array<i64: 2, 1, 1>, scalar_prefetch = 0 : i64, scratch_operands = 1 : i64, tpu.core_type = #tpu.core_type<tc>, window_params = [{transform_indices = @transform_0, window_bounds = array<i64: 18, 16>}, {transform_indices = @transform_1, window_bounds = array<i64: 1, 16, 32>}, {transform_indices = @transform_2, window_bounds = array<i64: 1, 18, 32>}]} {
    %c0_i32 = arith.constant 0 : i32
    %0 = arith.cmpi eq, %arg2, %c0_i32 : i32
    %1 = arith.extui %0 : i1 to i32
    %c0_i32_0 = arith.constant 0 : i32
    %2 = arith.cmpi ne, %1, %c0_i32_0 : i32
    scf.if %2 {
      %cst_11 = arith.constant 0.000000e+00 : f32
      %13 = vector.broadcast %cst_11 : f32 to vector<18x32xf32>
      %c0_12 = arith.constant 0 : index
      %c0_13 = arith.constant 0 : index
      %14 = vector.load %arg6[%c0_12, %c0_13] : memref<18x32xf32, #tpu.memory_space<vmem>>, vector<18x32xf32>
      tpu.vector_store %arg6[%c0_12, %c0_13], %13 {strides = array<i32>} : memref<18x32xf32, #tpu.memory_space<vmem>>, vector<18x32xf32>,
    } else {
    }
    %c0 = arith.constant 0 : index
    %c0_1 = arith.constant 0 : index
    %3 = vector.load %arg6[%c0, %c0_1] : memref<18x32xf32, #tpu.memory_space<vmem>>, vector<18x32xf32>
    %c0_2 = arith.constant 0 : index
    %c0_3 = arith.constant 0 : index
    %4 = vector.load %arg3[%c0_2, %c0_3] : memref<18x16xf32, #tpu.memory_space<vmem>>, vector<18x16xf32>
    %c0_4 = arith.constant 0 : index
    %c0_5 = arith.constant 0 : index
    %c0_6 = arith.constant 0 : index
    %5 = vector.load %arg4[%c0_4, %c0_5, %c0_6] : memref<1x16x32xf32, #tpu.memory_space<vmem>>, vector<1x16x32xf32>
    %6 = vector.shape_cast %5 : vector<1x16x32xf32> to vector<16x32xf32>
    %cst = arith.constant dense<0.000000e+00> : vector<18x32xf32>
    %7 = tpu.matmul %4, %6, %cst {dimension_numbers = #tpu.dot_dimension_numbers<[1], [0], [0], [1], [0, 0, 1, 1], [], []>} : vector<18x16xf32>, vector<16x32xf32>, vector<18x32xf32> -> vector<18x32xf32>
    %8 = arith.addf %3, %7 : vector<18x32xf32>
    %c0_7 = arith.constant 0 : index
    %c0_8 = arith.constant 0 : index
    %9 = vector.load %arg6[%c0_7, %c0_8] : memref<18x32xf32, #tpu.memory_space<vmem>>, vector<18x32xf32>
    tpu.vector_store %arg6[%c0_7, %c0_8], %8 {strides = array<i32>} : memref<18x32xf32, #tpu.memory_space<vmem>>, vector<18x32xf32>,
    %c0_i32_9 = arith.constant 0 : i32
    %10 = arith.cmpi eq, %arg2, %c0_i32_9 : i32
    %11 = arith.extui %10 : i1 to i32
    %c0_i32_10 = arith.constant 0 : i32
    %12 = arith.cmpi ne, %11, %c0_i32_10 : i32
    scf.if %12 {
      %c0_11 = arith.constant 0 : index
      %c0_12 = arith.constant 0 : index
      %13 = vector.load %arg6[%c0_11, %c0_12] : memref<18x32xf32, #tpu.memory_space<vmem>>, vector<18x32xf32>
      %c0_13 = arith.constant 0 : index
      %c0_14 = arith.constant 0 : index
      %c0_15 = arith.constant 0 : index
      %14 = vector.load %arg5[%c0_13, %c0_14, %c0_15] : memref<1x18x32xf32, #tpu.memory_space<vmem>>, vector<1x18x32xf32>
      %15 = vector.shape_cast %14 : vector<1x18x32xf32> to vector<18x32xf32>
      %16 = vector.shape_cast %13 : vector<18x32xf32> to vector<1x18x32xf32>
      tpu.vector_store %arg5[%c0_13, %c0_14, %c0_15], %16 {strides = array<i32>} : memref<1x18x32xf32, #tpu.memory_space<vmem>>, vector<1x18x32xf32>,
    } else {
    }
    return
  }
  func.func @transform_0(%arg0: i32, %arg1: i32, %arg2: i32) -> (i32, i32) {
    %c0_i32 = arith.constant 0 : i32
    return %arg1, %arg2 : i32, i32
  }
  func.func @transform_1(%arg0: i32, %arg1: i32, %arg2: i32) -> (i32, i32, i32) {
    %c0_i32 = arith.constant 0 : i32
    %c0_i32_0 = arith.constant 0 : i32
    return %arg0, %arg2, %c0_i32 : i32, i32, i32
  }
  func.func @transform_2(%arg0: i32, %arg1: i32, %arg2: i32) -> (i32, i32, i32) {
    %c0_i32 = arith.constant 0 : i32
    %c0_i32_0 = arith.constant 0 : i32
    return %arg0, %arg1, %c0_i32 : i32, i32, i32
  }
}

</mosaic_0001>

<bundles_post_ra>
// kernel: custom-call
= control target key start
LH: loop header
LB: loop body
LE: loop exit
PB: predicated region body
PF: predicated region fallthrough
CT: control target
= control target key end

     0   :  { %s112_s0 = inlined_call_operand.vmem [shape: f32[2,16,32], index: 0, kind: input, shape index: {}]   ;;  %s113_s1 = inlined_call_operand.vmem [shape: f32[2,16,32], index: 1, kind: input, shape index: {}]   ;;  %s114_s2 = inlined_call_operand.vmem [shape: c64[2,16,32], index: 2, kind: output, shape index: {}]  }
   0x1   :  { %v5_v0 = vld [vmem:[%s112_s0] sm:$0xff]  ;;  %v36_v1 = vld [vmem:[%s112_s0 + $0x8] sm:$0xff]  ;;  %v38_v2 = vld [vmem:[%s112_s0 + $0x10] sm:$0xff] }
   0x2   :  { %6 = vst [vmem:[%s114_s2] sm:$0xff] %v5_v0  ;;  %37 = vst [vmem:[%s114_s2 + $0x8] sm:$0xff] %v36_v1  ;;  %v40_v3 = vld [vmem:[%s112_s0 + $0x18] sm:$0xff]  ;;  %v19_v4 = vld [vmem:[%s113_s1] sm:$0xff] }
   0x3   :  { %39 = vst [vmem:[%s114_s2 + $0x10] sm:$0xff] %v38_v2  ;;  %v43_v5 = vld [vmem:[%s113_s1 + $0x8] sm:$0xff]  ;;  %41 = vst [vmem:[%s114_s2 + $0x18] sm:$0xff] %v40_v3  ;;  %v45_v6 = vld [vmem:[%s113_s1 + $0x10] sm:$0xff] }
   0x4   :  { %42 = vst [vmem:[%s114_s2 + $0x20] sm:$0xff] %v19_v4  ;;  %44 = vst [vmem:[%s114_s2 + $0x28] sm:$0xff] %v43_v5  ;;  %v47_v7 = vld [vmem:[%s113_s1 + $0x18] sm:$0xff] }
   0x5   :  { %46 = vst [vmem:[%s114_s2 + $0x30] sm:$0xff] %v45_v6  ;;  %48 = vst [vmem:[%s114_s2 + $0x38] sm:$0xff] %v47_v7 }

// kernel: _fft_core.1
= control target key start
LH: loop header
LB: loop body
LE: loop exit
PB: predicated region body
PF: predicated region fallthrough
CT: control target
= control target key end

     0   :  { %s563_s9 = smov 0   ;;  %s565_s10 = smov 0   ;;  %s621_s0 = inlined_call_operand.vmem [shape: f32[18,16], index: 0, kind: input, shape index: {}]   ;;  %s622_s1 = inlined_call_operand.vmem [shape: f32[2,16,32], index: 1, kind: input, shape index: {}]   ;;  %s623_s2 = inlined_call_operand.vmem [shape: f32[2,18,32], index: 2, kind: output, shape index: {}]  }
   0x1   :  { %s567_s11 = smov 0  }
   0x2 LB: > { %s31_s12 = sadd.s32 1, %s539_s10  ;;  %p460_p0 = scmp.ge.s32.totalorder %s543_s11, 1  ;;  %s543_s11 = sphi %s567_s11, %s12_s11   ;;  %s539_s10 = sphi %s565_s10, %s625_s10   ;;  %s535_s9 = sphi %s563_s9, %s624_s9  }
   0x3   : > { %p33_p1 = scmp.ge.s32.totalorder %s31_s12, 2  ;;  %p156_p2 = scmp.lt.s32.totalorder %s543_s11, 3 }
   0x5   : > { %s627_s12 = smov (%p33_p1, %s31_s12), 0  ;;  %p157_p3 = pnand %p460_p0, %p156_p2 }
   0x6   : > { %p204_p4 = scmp.lt.s32.totalorder (!%p157_p3), %s535_s9, 1  ;;  %v545_v0 = vmov (!%p157_p3), 0.0|0.0   ;;  %vm227_vm0 = vcmask (!%p157_p3), 261120   ;;  %vm546_vm1 = vmmov (!%p157_p3), 0   ;;  %v547_v1 = vmov (!%p157_p3), 0.0   ;;  %v236_v5 = vld [vmem:[%s621_s0 + $0x8] sm:$0xff] (!%p157_p3) }
   0x7   : > { %160 = sbr.rel (%p157_p3) target bundleno = 250 (0xfa), region = 28  ;;  %491 = vmatprep.subr.bf16.mxu1 (!%p157_p3), %v545_v0  ;;  %488 = vmatprep.subr.bf16.mxu0 (!%p157_p3), %v545_v0  ;;  %229 = vst.msk [vmem:[#allocation2 + $0x8] sm:$0xff] (!%p157_p3), %vm227_vm0, %v547_v1  ;;  %228 = vst.msk [vmem:[#allocation2] sm:$0xff] (!%p157_p3), %vm227_vm0, %v547_v1  ;;  %vm240_vm2 = vcmask (!%p157_p3), 130048   ;;  %v235_v6 = vld [vmem:[%s621_s0] sm:$0xff] (!%p157_p3)  ;;  %vm230_vm3 = vcmask (!%p157_p3), 254976  }
   0x8   : > { %482 = vmatprep.mubr.msk.f32.mxu1 (!%p157_p3), %vm546_vm1, %v547_v1  ;;  %479 = vmatprep.mubr.msk.f32.mxu0 (!%p157_p3), %vm546_vm1, %v547_v1  ;;  %v237_v7 = vld [vmem:[%s621_s0 + $0x10] sm:$0x3] (!%p157_p3)  ;;  %231 = vst.msk [vmem:[#allocation2 + $0x10] sm:$0x3] (!%p157_p3), %vm230_vm3, %v547_v1 }
   0xe   : > { %s629_s9 = smov (!%p204_p4, %s535_s9), 1  ;;  %v233_v8 = vld [vmem:[#allocation2 + $0x8] sm:$0xff]  ;;  %v232_v9 = vld [vmem:[#allocation2] sm:$0xff] }
   0xf   : > { %s469_s13 = sshll.u32 %s629_s9, 4  ;;  %v234_v16 = vld [vmem:[#allocation2 + $0x10] sm:$0x3]  ;;  %s493_s23 = smul.u32 24, %s629_s9 }
  0x10   : > { %s211_s16 = scalar_lea.vmem %s622_s1, %s469_s13 }
  0x11   : > { %v238_v2 = vld [vmem:[%s211_s16] sm:$0xff]  ;;  %v239_v3 = vld [vmem:[%s211_s16 + $0x8] sm:$0xff]  ;;  %s221_s26 = scalar_lea.vmem %s623_s2, %s493_s23 }
  0x12   : > { %v489_v4 = vpack.c.bf16 %v239_v3, %v238_v2 }
  0x14   : > { %492 = vmatpush3.bf16.msra.mxu1 %v489_v4  ;;  %490 = vmatpush3.bf16.msra.mxu0 %v489_v4 }
  0x17   : > { %483 = vmatmul.mubr.msk.f32.vlgmr.msra.gmra.mrb[0].mxu1 %vm240_vm2, %v236_v5  ;;  %480 = vmatmul.mubr.msk.f32.vlgmr.msra.gmra.mrb[0].mxu0 %vm240_vm2, %v235_v6 }
  0x18   : > { %485 = vmatprep.mubr.msk.f32.mxu1 %vm546_vm1, %v547_v1 }
  0x1b   : > { %486 = vmatmul.mubr.msk.f32.gmra.mrb[2].mxu1 %vm240_vm2, %v237_v7 }
  0xea   : > { %v321_v10 = vpop.f32.mrb[0].mxu1  ;;  %v316_v11 = vpop.f32.mrb[0].mxu0 }
  0xeb   : > { %v331_v12 = vadd.f32 %v321_v10, %v233_v8  ;;  %v484_v13 = vpop.f32.mrb[1].mxu1  ;;  %v330_v14 = vadd.f32 %v316_v11, %v232_v9  ;;  %v481_v15 = vpop.f32.mrb[1].mxu0 }
  0xed   : > { %335 = vst.msk [vmem:[#allocation2 + $0x8] sm:$0xff] %vm227_vm0, %v331_v12  ;;  %334 = vst.msk [vmem:[#allocation2] sm:$0xff] %vm227_vm0, %v330_v14 }
  0xee   : > { %v326_v17 = vpop.f32.mrb[2].mxu1 }
  0xef   : > { %v332_v18 = vadd.f32 %v326_v17, %v234_v16  ;;  %v487_v19 = vpop.f32.mrb[3].mxu1 }
  0xf1   : > { %337 = vst.msk [vmem:[#allocation2 + $0x10] sm:$0x3] %vm230_vm3, %v332_v18 }
  0xf4   : > { %v342_v20 = vld [vmem:[#allocation2 + $0x8] sm:$0xff]  ;;  %v341_v21 = vld [vmem:[#allocation2] sm:$0xff] }
  0xf5   : > { %345 = vst.msk [vmem:[%s221_s26 + $0x8] sm:$0xff] %vm227_vm0, %v342_v20  ;;  %344 = vst.msk [vmem:[%s221_s26] sm:$0xff] %vm227_vm0, %v341_v21 }
  0xf8   : > { %v343_v22 = vld [vmem:[#allocation2 + $0x10] sm:$0x3] }
  0xf9   : > { %346 = vst.msk [vmem:[%s221_s26 + $0x10] sm:$0x3] %vm230_vm3, %v343_v22 }
  0xfa PF: > { %s12_s11 = sadd.s32 1, %s543_s11   ;;  %s624_s9 = smov %s539_s10 }
  0xfb   : > { %p9_p5 = scmp.ge.s32.totalorder %s12_s11, 4   ;;  %s625_s10 = smov %s627_s12 }
  0xfd   :  { %11 = sbr.rel (!%p9_p5) target bundleno = 2 (0x2), region = 69 }

</bundles_post_ra>
